<compile_context>
chip_gen: v7x
topology: tpu7x:2x2x1
jax: 0.10.0
libtpu: 0.0.40
codegen_flags: <defaults>
</compile_context>

<pallas_src>
import jax
import jax.numpy as jnp
from jax.experimental import pallas as pl
from jax.experimental.pallas import tpu as pltpu


def _round_up(x, m):
    return (x + m - 1) // m * m


def _patch_embed_kernel(x_ref, w_ref, b_ref, o_ref):
    # x_ref: (tm, K_pad) patch tile (streams), w_ref: (K_pad, E_pad) VMEM-resident,
    # b_ref: (1, E_pad) f32 resident, o_ref: (tm, E_pad).
    acc = jnp.dot(x_ref[...], w_ref[...], preferred_element_type=jnp.float32)
    o_ref[...] = (acc + b_ref[...]).astype(o_ref.dtype)


def _resident_spec(shape):
    # Constant-index (VMEM-resident) operand: single-buffer it to save VMEM.
    # Falls back to the default (double-buffered) spec if this Pallas version
    # does not expose pipeline_mode / Buffered.
    try:
        return pl.BlockSpec(shape, lambda i: (0, 0), pipeline_mode=pl.Buffered(1))
    except (TypeError, AttributeError):
        return pl.BlockSpec(shape, lambda i: (0, 0))


def patch_embedding(x, weight, bias, patch_size, *,
                    compute_dtype=jnp.bfloat16, out_dtype=None,
                    tm=2048, vmem_budget_bytes=48 * 1024 * 1024):
    """x: (B, C, H, W) NCHW.  weight: (E, C, p, p) (PyTorch Conv2d layout).  bias: (E,).

    Returns (B, num_patches, E), matching
      Conv2d(C, E, kernel_size=p, stride=p)(x).flatten(2).transpose(1, 2)
    """
    B, C, H, W = x.shape
    E = weight.shape[0]
    p = patch_size
    assert H % p == 0 and W % p == 0
    hp, wp = H // p, W // p
    n_patches = hp * wp
    K = C * p * p
    N = B * n_patches

    if compute_dtype is None:
        compute_dtype = x.dtype
    if out_dtype is None:
        out_dtype = x.dtype
    in_bytes = jnp.dtype(compute_dtype).itemsize
    out_bytes = jnp.dtype(out_dtype).itemsize
    sub = 16 if in_bytes == 2 else 8       # sublane granularity of the streamed tile

    # im2col: (B,C,hp,p,wp,p) -> (B,hp,wp,C,p,p) -> (N,K).  Feature order (c, pi, pj)
    # matches weight.reshape(E, K).  Cast to compute_dtype FIRST so XLA fuses the
    # convert into the single transpose pass and the intermediate is half width.
    # TODO(synk): fuse this rearrangement into the kernel (grid over (b, patch-row)
    # with an NCHW (1, C, th*p, W) tile); blocked on Mosaic support for the required
    # lane->sublane relayout of the inner patch columns for general patch sizes.
    patches = x.astype(compute_dtype).reshape(B, C, hp, p, wp, p)
    patches = patches.transpose(0, 2, 4, 1, 3, 5).reshape(N, K)

    w_mat = weight.reshape(E, K).T.astype(compute_dtype)   # (K, E)
    b_row = bias.reshape(1, E).astype(jnp.float32)         # (1, E) f32

    # Lane-dense output E (unmasked stores, full MXU lanes) and lane-aligned K.
    E_pad = _round_up(E, 128)
    K_pad = _round_up(K, 128)   # zero columns x zero weight rows -> exact no-op
    if E_pad != E:
        w_mat = jnp.pad(w_mat, ((0, 0), (0, E_pad - E)))
        b_row = jnp.pad(b_row, ((0, 0), (0, E_pad - E)))
    if K_pad != K:
        patches = jnp.pad(patches, ((0, 0), (0, K_pad - K)))
        w_mat = jnp.pad(w_mat, ((0, K_pad - K), (0, 0)))

    # Row tile: large enough to amortize ~0.35us/step pipeline overhead, capped so
    # (a) the single "parallel" grid axis keeps >= ~8 tiles (v7x: 2 TCs/chip) and
    # (b) double-buffered patch+output tiles plus the resident weight fit a
    #     v7x-safe (<=48 MiB of the 64 MiB/TC) VMEM budget.
    tm = max(sub, min(tm, _round_up(-(-N // 8), sub)))
    tm = _round_up(tm, sub)

    def _vmem_need(t):
        return (2 * t * K_pad * in_bytes        # streamed patch tile (double-buffered)
                + 2 * t * E_pad * out_bytes     # output tile (double-buffered)
                + K_pad * E_pad * in_bytes      # weight (resident, single-buffered)
                + E_pad * 4)                    # bias (f32, resident)

    while tm > 4 * sub and _vmem_need(tm) > vmem_budget_bytes:
        tm = _round_up(tm // 2, sub)

    N_pad = _round_up(N, tm)
    if N_pad != N:
        # Padded rows produce bias-valued junk in [N:N_pad); they are sliced off below.
        patches = jnp.pad(patches, ((0, N_pad - N), (0, 0)))

    grid = (N_pad // tm,)
    vmem_limit = int(min(max(_vmem_need(tm) * 3 // 2, 32 * 1024 * 1024),
                         48 * 1024 * 1024))

    out = pl.pallas_call(
        _patch_embed_kernel,
        out_shape=jax.ShapeDtypeStruct((N_pad, E_pad), out_dtype),
        grid_spec=pl.GridSpec(
            grid=grid,
            in_specs=[
                # Streamed patch tile (double-buffered by default; consider
                # pipeline_mode=pl.Buffered(3) on v5e/v6e if a profile shows exposed DMA).
                pl.BlockSpec((tm, K_pad), lambda i: (i, 0)),
                _resident_spec((K_pad, E_pad)),   # weight: VMEM-resident, single-buffered
                _resident_spec((1, E_pad)),       # bias:   VMEM-resident, single-buffered
            ],
            out_specs=pl.BlockSpec((tm, E_pad), lambda i: (i, 0)),
        ),
        compiler_params=pltpu.CompilerParams(
            dimension_semantics=("parallel",),    # shards row tiles across TCs on v7x
            vmem_limit_bytes=vmem_limit,
        ),
    )(patches, w_mat, b_row)

    out = out[:N, :E]
    return out.reshape(B, n_patches, E)


def _reference(x, weight, bias, patch_size):
    # Pure-JAX f32 reference: strided conv (NCHW/OIHW) + bias, then flatten+transpose.
    y = jax.lax.conv_general_dilated(
        x, weight,
        window_strides=(patch_size, patch_size),
        padding="VALID",
        dimension_numbers=("NCHW", "OIHW", "NCHW"),
        precision=jax.lax.Precision.HIGHEST)
    y = y + bias.reshape(1, -1, 1, 1)
    B, E, hp, wp = y.shape
    return y.reshape(B, E, hp * wp).transpose(0, 2, 1)


if __name__ == "__main__":
    B, C, H, W = 2, 4, 16, 16
    patch_size = 4
    embed_dim = 32

    key = jax.random.PRNGKey(0)
    kx, kw, kb = jax.random.split(key, 3)
    x = jax.random.normal(kx, (B, C, H, W), dtype=jnp.float32)
    # Deterministic Conv2d parameters (PyTorch weight layout: (E, C, p, p)).
    weight = jax.random.normal(kw, (embed_dim, C, patch_size, patch_size),
                               dtype=jnp.float32) * 0.02
    bias = jax.random.normal(kb, (embed_dim,), dtype=jnp.float32) * 0.02

    n_patches = (H // patch_size) * (W // patch_size)
    ref = _reference(x, weight, bias, patch_size)

    # 1) f32 compute path: semantics check against the Conv2d reference.
    out_f32 = patch_embedding(x, weight, bias, patch_size, compute_dtype=jnp.float32)
    out_f32 = jax.block_until_ready(out_f32)
    assert out_f32.shape == (B, n_patches, embed_dim)
    assert jnp.allclose(out_f32, ref, atol=5e-3, rtol=5e-3)

    # 2) Default path (bf16 streams, f32 accumulate): looser tolerance vs f32 reference.
    out_bf16 = patch_embedding(x, weight, bias, patch_size)
    out_bf16 = jax.block_until_ready(out_bf16)
    assert out_bf16.shape == (B, n_patches, embed_dim)
    assert jnp.allclose(out_bf16, ref, atol=3e-2, rtol=3e-2)

    print("KERNEL_OK")
</pallas_src>

<mosaic_0001>
module attributes {stable_mosaic.version = 11 : i64} {
  func.func @_patch_embed_kernel(%arg0: i32, %arg1: memref<8x128xf32, #tpu.memory_space<vmem>>, %arg2: memref<128x128xf32, #tpu.memory_space<vmem>>, %arg3: memref<1x128xf32, #tpu.memory_space<vmem>>, %arg4: memref<8x128xf32, #tpu.memory_space<vmem>>) attributes {dimension_semantics = [#tpu.dimension_semantics<parallel>], iteration_bounds = array<i64: 4>, scalar_prefetch = 0 : i64, scratch_operands = 0 : i64, tpu.core_type = #tpu.core_type<tc>, window_params = [{transform_indices = @transform_0, window_bounds = array<i64: 8, 128>}, {pipeline_mode = #tpu.pipeline_mode<synchronous>, transform_indices = @transform_1, window_bounds = array<i64: 128, 128>}, {pipeline_mode = #tpu.pipeline_mode<synchronous>, transform_indices = @transform_2, window_bounds = array<i64: 1, 128>}, {transform_indices = @transform_3, window_bounds = array<i64: 8, 128>}]} {
    %c0 = arith.constant 0 : index
    %c0_0 = arith.constant 0 : index
    %0 = vector.load %arg1[%c0, %c0_0] : memref<8x128xf32, #tpu.memory_space<vmem>>, vector<8x128xf32>
    %c0_1 = arith.constant 0 : index
    %c0_2 = arith.constant 0 : index
    %1 = vector.load %arg2[%c0_1, %c0_2] : memref<128x128xf32, #tpu.memory_space<vmem>>, vector<128x128xf32>
    %cst = arith.constant dense<0.000000e+00> : vector<8x128xf32>
    %2 = tpu.matmul %0, %1, %cst {dimension_numbers = #tpu.dot_dimension_numbers<[1], [0], [0], [1], [0, 0, 1, 1], [], []>} : vector<8x128xf32>, vector<128x128xf32>, vector<8x128xf32> -> vector<8x128xf32>
    %c0_3 = arith.constant 0 : index
    %c0_4 = arith.constant 0 : index
    %3 = vector.load %arg3[%c0_3, %c0_4] : memref<1x128xf32, #tpu.memory_space<vmem>>, vector<1x128xf32>
    %4 = vector.broadcast %3 : vector<1x128xf32> to vector<8x128xf32>
    %5 = arith.addf %2, %4 : vector<8x128xf32>
    %c0_5 = arith.constant 0 : index
    %c0_6 = arith.constant 0 : index
    %6 = vector.load %arg4[%c0_5, %c0_6] : memref<8x128xf32, #tpu.memory_space<vmem>>, vector<8x128xf32>
    tpu.vector_store %arg4[%c0_5, %c0_6], %5 {strides = array<i32>} : memref<8x128xf32, #tpu.memory_space<vmem>>, vector<8x128xf32>,
    return
  }
  func.func @transform_0(%arg0: i32) -> (i32, i32) {
    %c0_i32 = arith.constant 0 : i32
    %c0_i32_0 = arith.constant 0 : i32
    return %arg0, %c0_i32 : i32, i32
  }
  func.func @transform_1(%arg0: i32) -> (i32, i32) {
    %c0_i32 = arith.constant 0 : i32
    %c0_i32_0 = arith.constant 0 : i32
    %c0_i32_1 = arith.constant 0 : i32
    return %c0_i32, %c0_i32_0 : i32, i32
  }
  func.func @transform_2(%arg0: i32) -> (i32, i32) {
    %c0_i32 = arith.constant 0 : i32
    %c0_i32_0 = arith.constant 0 : i32
    %c0_i32_1 = arith.constant 0 : i32
    return %c0_i32, %c0_i32_0 : i32, i32
  }
  func.func @transform_3(%arg0: i32) -> (i32, i32) {
    %c0_i32 = arith.constant 0 : i32
    %c0_i32_0 = arith.constant 0 : i32
    return %arg0, %c0_i32 : i32, i32
  }
}

</mosaic_0001>

<bundles_post_ra>
// kernel: tpu_custom_call.1
= control target key start
LH: loop header
LB: loop body
LE: loop exit
PB: predicated region body
PF: predicated region fallthrough
CT: control target
= control target key end

     0   :  { %8 = vsyncpa [#allocation3], 0  ;;  %s898_s0 = inlined_call_operand.hbm [shape: f32[32,128], index: 0, kind: input, shape index: {}]   ;;  %s899_s1 = inlined_call_operand.hbm [shape: f32[128,128], index: 1, kind: input, shape index: {}]   ;;  %s900_s2 = inlined_call_operand.vmem [shape: f32[1,128], index: 2, kind: input, shape index: {}]   ;;  %s901_s3 = inlined_call_operand.hbm [shape: f32[32,128], index: 3, kind: output, shape index: {}]  }
   0x1   :  { %10 = vsyncpa [#allocation3 + $0x1], 0 }
   0x2   :  { %11 = vsyncpa [#allocation6], 0 }
   0x3   :  { %12 = vsyncpa [#allocation4], 0 }
   0x4   :  { %14 = vsyncpa [#allocation4 + $0x1], 0  ;;  %s701_s12 = smov 0   ;;  %s703_s13 = smov 0  }
   0x5   :  { %s705_s14 = smov 0   ;;  %s707_s15 = smov 0  }
   0x6 LB: > { %s722_s16 = sadd.s32 4294967295, %s671_s15   ;;  %s390_s17 = sadd.s32 4294967294, %s671_s15   ;;  %s671_s15 = sphi %s707_s15, %s920_s15   ;;  %s667_s14 = sphi %s705_s14, %s919_s14   ;;  %s663_s13 = sphi %s703_s13, %s918_s13   ;;  %s659_s12 = sphi %s701_s12, %s917_s12  }
   0x7   : > { %p40_p0 = scmp.ne.s32.totalorder %s663_s13, %s659_s12  ;;  %p902_p1 = scmp.eq.s32.totalorder %s722_s16, 0 }
   0x8   : > { %p112_p3 = scmp.eq.s32.totalorder %s390_s17, 3  ;;  %p391_p5 = scmp.ge.s32.totalorder %s671_s15, 1 }
   0x9   : > { %p731_p4 = por %p902_p1, %p40_p0  ;;  %p119_p7 = scmp.lt.s32.totalorder %s671_s15, 5 }
   0xa   : > { %p736_p6 = por %p112_p3, %p40_p0  ;;  %s673_s21 = smov [#allocation5]  }
   0xb   : > { %s905_s18 = scalar_select %p731_p4, 1, 0 }
   0xc   : > { %s906_s19 = scalar_select %p736_p6, 1, 0 }
   0xd   : > { %p741_p8 = pnand %p391_p5, %p119_p7  ;;  %s131_s22 = sshll.u32 %s673_s21, 4  ;;  %s132_s22 = int_to_ptr.vmem [resolvable:$true] %s131_s22 }
   0xe   : > { %s754_s24 = sadd.s32 1, %s671_s15   ;;  %s27_s25 = sadd.s32 1, %s667_s14 }
   0xf   : > { %s907_s20 = scalar_select %p741_p8, 1, 0 }
  0x10   : > { %p489_p9 = pneg %p741_p8  ;;  %s24_s26 = ssub.s32 %s671_s15, %s754_s24 }
  0x11   : > { %s543_s29 = scalar_lea.hbm %s899_s1, 2048 }
  0x12   : > { %p749_p10 = pnand %p489_p9, %p902_p1  ;;  %p544_p11 = scmp.ne.s32.totalorder %s899_s1, %s543_s29 }
  0x13   : > { %p550_p3 = scmp.lt.u32.totalorder %s543_s29, %s899_s1 }
  0x14   : > { %p545_p12 = pneg %p749_p10 }
  0x16   : > { %p546_p13 = pnand %p545_p12, %p544_p11 }
  0x18   : > { %p547_p0 = pneg %p546_p13 }
  0x1a   : > { %p552_p5 = pnand %p550_p3, %p547_p0 }
  0x1c   : > { %555 = shalt.err (!%p552_p5)
}
  0x1d   : > { %s556_s7 = scalar_lea.vmem %s132_s22, 2048  ;;  %p564_p2 = scmp.lt.s32.totalorder %s132_s22, %s132_s22 }
  0x1e   : > { %p557_p7 = scmp.ne.s32.totalorder %s132_s22, %s556_s7  ;;  %p565_p6 = scmp.lt.s32.totalorder %s556_s7, %s556_s7 }
  0x20   : > { %p559_p9 = pnand %p557_p7, %p545_p12  ;;  %p566_p4 = por %p565_p6, %p564_p2 }
  0x22   : > { %p560_p1 = pneg %p559_p9 }
  0x24   : > { %p567_p8 = pnand %p566_p4, %p560_p1 }
  0x26   : > { %570 = shalt.err (!%p567_p8)
}
  0x27   : > { %s674_s8 = smov 128   ;;  %s675_s9 = smov 8  }
  0x28   : > { %492 = dma.hbm_to_vmem [thread:$0]  (!%p749_p10), %s899_s1, 2048, %s132_s22, [#allocation6], %s674_s8, %s674_s8, %s675_s9  }
  0x29   : > { %p25_p11 = scmp.eq.s32.totalorder %s24_s26, 0  ;;  %p34_p2 = scmp.ne.s32.totalorder %s667_s14, %s663_s13 }
  0x2a   : > { %p35_p1 = scmp.eq.s32.totalorder %s671_s15, 0  ;;  %p502_p4 = scmp.lt.s32.totalorder %s671_s15, 4 }
  0x2b   : > { %s780_s17 = scalar_select %p25_p11, %s667_s14, %s27_s25  }
  0x2c   : > { %p36_p6 = por %p35_p1, %p34_p2  ;;  %p909_p8 = scmp.eq.s32.totalorder %s722_s16, 3 }
  0x2d   : > { %s148_s27 = sand.u32 1, %s667_s14   ;;  %s395_s28 = sshll.u32 %s671_s15, 7 }
  0x2e   : > { %p784_p12 = por %p909_p8, %p34_p2  ;;  %s394_s29 = sshll.u32 %s148_s27, 3 }
  0x2f   : > { %s793_s4 = scalar_lea.hbm %s898_s0, %s395_s28  ;;  %s152_s22 = scalar_lea.vmem [#allocation2], %s394_s29 }
  0x30   : > { %s159_s25 = sshll.u32 %s152_s22, 4  ;;  %p795_p10 = pnand %p502_p4, %p36_p6  ;;  %s799_s25 = int_to_ptr.vmem [resolvable:$true] %s159_s25 }
  0x31   : > { %s149_s5 = scalar_lea.sflag [#allocation3], %s148_s27  ;;  %s571_s6 = scalar_lea.hbm %s793_s4, 128 }
  0x32   : > { %p572_p13 = scmp.ne.s32.totalorder %s793_s4, %s571_s6  ;;  %p573_p0 = pneg %p795_p10 }
  0x33   : > { %s576_s9 = scalar_lea.hbm %s898_s0, 512  ;;  %p577_p7 = scmp.lt.u32.totalorder %s793_s4, %s898_s0 }
  0x34   : > { %p574_p3 = pnand %p573_p0, %p572_p13  ;;  %p578_p9 = scmp.lt.u32.totalorder %s576_s9, %s571_s6 }
  0x35   : > { %p580_p2 = scmp.lt.u32.totalorder %s571_s6, %s793_s4 }
  0x36   : > { %p575_p5 = pneg %p574_p3  ;;  %p579_p11 = por %p578_p9, %p577_p7 }
  0x38   : > { %p581_p1 = por %p580_p2, %p579_p11 }
  0x3a   : > { %p582_p4 = pnand %p581_p1, %p575_p5 }
  0x3c   : > { %585 = shalt.err (!%p582_p4)
}
  0x3d   : > { %s586_s27 = scalar_lea.vmem %s799_s25, 128  ;;  %s676_s28 = smov [#allocation2]  }
  0x3e   : > { %p587_p6 = scmp.ne.s32.totalorder %s799_s25, %s586_s27  ;;  %s591_s29 = sshll.u32 %s676_s28, 4  ;;  %s592_s29 = int_to_ptr.vmem [resolvable:$false] %s591_s29 }
  0x3f   : > { %s593_s23 = scalar_lea.vmem %s592_s29, 256  ;;  %p594_p3 = scmp.lt.s32.totalorder %s799_s25, %s592_s29 }
  0x40   : > { %p589_p8 = pnand %p587_p6, %p573_p0  ;;  %p595_p7 = scmp.lt.s32.totalorder %s593_s23, %s586_s27 }
  0x42   : > { %p590_p13 = pneg %p589_p8  ;;  %p596_p9 = por %p595_p7, %p594_p3 }
  0x44   : > { %p597_p11 = pnand %p596_p9, %p590_p13 }
  0x46   : > { %600 = shalt.err (!%p597_p11)
}
  0x47   : > { %496 = dma.hbm_to_vmem [thread:$0]  (!%p795_p10), %s793_s4, 128, %s799_s25, %s149_s5  }
  0x48   : > { %p912_p5 = scmp.ne.s32.totalorder %s907_s20, 0 }
  0x49   : > { %s829_s30 = sand.u32 (!%p912_p5), 1, %s663_s13   ;;  %p913_p0 = scmp.ne.s32.totalorder (!%p912_p5), %s905_s18, 0 }
  0x4a   : > { %168 = sbr.rel (%p912_p5) target bundleno = 347 (0x15b), region = 32  ;;  %s397_s22 = sshll.u32 (!%p912_p5), %s829_s30, 3 }
  0x4b   : > { %s171_s6 = scalar_lea.sflag (!%p912_p5), [#allocation3], %s829_s30  ;;  %s835_s7 = scalar_lea.vmem (!%p912_p5), [#allocation2], %s397_s22 }
  0x51   : > { %646 = dma.done.wait (%p913_p0), %s171_s6, 128  }
  0x52   : > { %648 = vsyncadd (%p913_p0), %s171_s6, 4294967168  ;;  %p914_p10 = scmp.eq.s32.totalorder %s722_s16, 0 }
  0x54   : > { %650 = dma.done.wait (%p914_p10), [#allocation6], 2048   ;;  %p915_p2 = pmov %p914_p10 }
  0x55   : > { %v677_v0 = vmov 0.0|0.0   ;;  %vm678_vm0 = vmmov 0   ;;  %v679_v1 = vmov 0.0   ;;  %v202_v2 = vld [vmem:[#allocation5] sm:$0xff]  ;;  %v203_v3 = vld [vmem:[#allocation5 + $0x8] sm:$0xff]  ;;  %v204_v4 = vld [vmem:[#allocation5 + $0x10] sm:$0xff] }
  0x56   : > { %652 = vsyncadd (%p915_p2), [#allocation6], 4294965248  ;;  %457 = vmatprep.subr.bf16.mxu0 %v677_v0  ;;  %454 = vmatprep.mubr.msk.f32.mxu0 %vm678_vm0, %v679_v1  ;;  %v458_v5 = vpack.c.bf16 %v203_v3, %v202_v2  ;;  %v205_v6 = vld [vmem:[#allocation5 + $0x18] sm:$0xff]  ;;  %v206_v8 = vld [vmem:[#allocation5 + $0x20] sm:$0xff]  ;;  %s402_s4 = sshll.u32 %s722_s16, 7  ;;  %s200_s25 = scalar_lea.vmem [#allocation7], %s397_s22 }
  0x57   : > { %v461_v7 = vpack.c.bf16 %v205_v6, %v204_v4  ;;  %v207_v9 = vld [vmem:[#allocation5 + $0x28] sm:$0xff]  ;;  %v208_v11 = vld [vmem:[#allocation5 + $0x30] sm:$0xff]  ;;  %v209_v12 = vld [vmem:[#allocation5 + $0x38] sm:$0xff]  ;;  %s310_s26 = sshll.u32 %s200_s25, 4  ;;  %s855_s9 = scalar_lea.hbm %s901_s3, %s402_s4  ;;  %s857_s26 = int_to_ptr.vmem [resolvable:$true] %s310_s26 }
  0x58   : > { %459 = vmatpush3.bf16.msra.mxu0 %v458_v5  ;;  %v464_v10 = vpack.c.bf16 %v207_v9, %v206_v8  ;;  %v467_v13 = vpack.c.bf16 %v209_v12, %v208_v11  ;;  %v210_v14 = vld [vmem:[#allocation5 + $0x40] sm:$0xff]  ;;  %v211_v15 = vld [vmem:[#allocation5 + $0x48] sm:$0xff]  ;;  %v212_v17 = vld [vmem:[#allocation5 + $0x50] sm:$0xff]  ;;  %s297_s10 = scalar_lea.sflag [#allocation4], %s829_s30  ;;  %s601_s11 = scalar_lea.vmem %s857_s26, 128 }
  0x59   : > { %460 = vmatprep.subr.bf16.mxu0 %v677_v0  ;;  %v470_v16 = vpack.c.bf16 %v211_v15, %v210_v14  ;;  %v213_v18 = vld [vmem:[#allocation5 + $0x58] sm:$0xff]  ;;  %v214_v20 = vld [vmem:[#allocation5 + $0x60] sm:$0xff]  ;;  %v215_v21 = vld [vmem:[#allocation5 + $0x68] sm:$0xff]  ;;  %p602_p1 = scmp.ne.s32.totalorder %s857_s26, %s601_s11  ;;  %s680_s16 = smov [#allocation7]  }
  0x5a   : > { %v473_v19 = vpack.c.bf16 %v213_v18, %v212_v17  ;;  %v476_v22 = vpack.c.bf16 %v215_v21, %v214_v20  ;;  %v216_v23 = vld [vmem:[#allocation5 + $0x70] sm:$0xff]  ;;  %v217_v24 = vld [vmem:[#allocation5 + $0x78] sm:$0xff]  ;;  %s605_s27 = sshll.u32 %s680_s16, 4  ;;  %s606_s27 = int_to_ptr.vmem [resolvable:$false] %s605_s27 }
  0x5b   : > { %v479_v25 = vpack.c.bf16 %v217_v24, %v216_v23  ;;  %v201_v26 = vld [vmem:[%s835_s7] sm:$0xff]  ;;  %p603_p4 = pnand %p602_p1, %p784_p12  ;;  %s607_s28 = scalar_lea.vmem %s606_s27, 256 }
  0x5c   : > { %462 = vmatpush3.bf16.msra.mxu0 %v461_v7  ;;  %v400_v27 = vld [vmem:[%s900_s2] ss:$0 sm:$0xff]  ;;  %p608_p8 = scmp.lt.s32.totalorder %s857_s26, %s606_s27  ;;  %p609_p13 = scmp.lt.s32.totalorder %s607_s28, %s601_s11 }
  0x5d   : > { %463 = vmatprep.subr.bf16.mxu0 %v677_v0  ;;  %p604_p6 = pneg %p603_p4 }
  0x5e   : > { %p610_p3 = por %p609_p13, %p608_p8 }
  0x60   : > { %465 = vmatpush3.bf16.msra.mxu0 %v464_v10  ;;  %p611_p7 = pnand %p610_p3, %p604_p6 }
  0x61   : > { %466 = vmatprep.subr.bf16.mxu0 %v677_v0 }
  0x64   : > { %468 = vmatpush3.bf16.msra.mxu0 %v467_v13 }
  0x65   : > { %469 = vmatprep.subr.bf16.mxu0 %v677_v0 }
  0x68   : > { %471 = vmatpush3.bf16.msra.mxu0 %v470_v16 }
  0x69   : > { %472 = vmatprep.subr.bf16.mxu0 %v677_v0 }
  0x6c   : > { %474 = vmatpush3.bf16.msra.mxu0 %v473_v19 }
  0x6d   : > { %475 = vmatprep.subr.bf16.mxu0 %v677_v0 }
  0x70   : > { %477 = vmatpush3.bf16.msra.mxu0 %v476_v22 }
  0x71   : > { %478 = vmatprep.subr.bf16.mxu0 %v677_v0 }
  0x74   : > { %480 = vmatpush3.bf16.msra.mxu0 %v479_v25 }
  0x77   : > { %455 = vmatmul.mubr.f32.vlgmr.msra.gmra.mrb[0].mxu0 %v201_v26 }
 0x14a   : > { %v291_v28 = vpop.f32.mrb[0].mxu0 }
 0x14b   : > { %v292_v29 = vadd.f32 %v400_v27, %v291_v28  ;;  %v456_v30 = vpop.f32.mrb[1].mxu0 }
 0x14d   : > { %295 = vst [vmem:[%s200_s25] sm:$0xff] %v292_v29 }
 0x14e   : > { %614 = shalt.err (!%p611_p7)
}
 0x14f   : > { %s615_s29 = scalar_lea.hbm %s855_s9, 128  ;;  %s619_s22 = scalar_lea.hbm %s901_s3, 512 }
 0x150   : > { %p616_p9 = scmp.ne.s32.totalorder %s855_s9, %s615_s29  ;;  %p620_p0 = scmp.lt.u32.totalorder %s855_s9, %s901_s3 }
 0x151   : > { %p621_p10 = scmp.lt.u32.totalorder %s619_s22, %s615_s29  ;;  %p623_p1 = scmp.lt.u32.totalorder %s615_s29, %s855_s9 }
 0x152   : > { %p617_p11 = pnand %p616_p9, %p784_p12 }
 0x153   : > { %p622_p2 = por %p621_p10, %p620_p0 }
 0x154   : > { %p618_p5 = pneg %p617_p11 }
 0x155   : > { %p624_p4 = por %p623_p1, %p622_p2 }
 0x157   : > { %p625_p6 = pnand %p624_p4, %p618_p5 }
 0x159   : > { %628 = shalt.err (!%p625_p6)
}
 0x15a   : > { %487 = dma.vmem_to_hbm [thread:$0]  (%p784_p12), %s857_s26, 128, %s855_s9, %s297_s10  }
 0x15b PF: > { %p504_p8 = scmp.ge.s32.totalorder %s671_s15, 2  ;;  %s322_s18 = sand.u32 1, %s659_s12  }
 0x15c   : > { %p916_p13 = scmp.ne.s32.totalorder %s906_s19, 0  ;;  %s323_s20 = scalar_lea.sflag [#allocation4], %s322_s18 }
 0x15e   : > { %p498_p3 = pnand %p504_p8, %p916_p13 }
 0x160   : > { %654 = dma.done.wait (!%p498_p3), %s323_s20, 128  }
 0x161   : > { %656 = vsyncadd (!%p498_p3), %s323_s20, 4294967168  ;;  %p17_p7 = scmp.ge.s32.totalorder %s754_s24, 6   ;;  %s917_s12 = smov %s663_s13 }
 0x162   : > { %s918_s13 = smov %s667_s14  ;;  %s919_s14 = smov %s780_s17 }
 0x163   : > { %s920_s15 = smov %s754_s24  ;;  %19 = sbr.rel (!%p17_p7) target bundleno = 6 (0x6), region = 81 }
 0x16a   :  { %328 = vsyncpa [#allocation3], 1 }
 0x16b   :  { %330 = vsyncpa [#allocation3 + $0x1], 1 }
 0x16c   :  { %331 = vsyncpa [#allocation6], 1 }
 0x16d   :  { %332 = vsyncpa [#allocation4], 1 }
 0x16e   :  { %334 = vsyncpa [#allocation4 + $0x1], 1 }

</bundles_post_ra>
